<compile_context>
chip_gen: v7x
topology: tpu7x:2x2x1
jax: 0.10.0
libtpu: 0.0.40
codegen_flags: <defaults>
</compile_context>

<pallas_src>
import functools

import jax
import jax.numpy as jnp
from jax.experimental import pallas as pl
from jax.experimental.pallas import tpu as pltpu


def _soft_iou_kernel(x_ref, t_ref, inter_ref, union_ref, *,
                     hw, tiles_per_split, needs_mask):
    s = pl.program_id(0)          # HW-split index (parallel)
    j = pl.program_id(2)          # HW-tile index within the split (reduction)

    # Zero the per-(split, n, c) accumulators on the first HW tile.
    @pl.when(j == 0)
    def _():
        inter_ref[...] = jnp.zeros_like(inter_ref)
        union_ref[...] = jnp.zeros_like(union_ref)

    x = x_ref[...].astype(jnp.float32)      # (C, T) logits (in-kernel cast)
    t = t_ref[...].astype(jnp.int32)        # (1, T) labels, widened in-kernel
    c, tile = x.shape

    # Numerically stable softmax over the channel (sublane) axis. One EUP
    # reciprocal on the (1, T) denominator + a (C, T) VPU multiply instead of a
    # full (C, T) divide.
    m = jnp.max(x, axis=0, keepdims=True)                    # (1, T)
    e = jnp.exp(x - m)                                       # (C, T)
    denom = jnp.sum(e, axis=0, keepdims=True)                # (1, T)
    pred = e * pl.reciprocal(denom, approx=False)            # (C, T)

    # In-kernel one-hot: channel iota per row vs. integer label per pixel.
    ch = jax.lax.broadcasted_iota(jnp.int32, (c, tile), 0)   # (C, T)
    onehot = t == ch                                         # (C, T) bool
    inter_term = jnp.where(onehot, pred, 0.0)                # pred * onehot
    union_term = jnp.where(onehot, 1.0, pred)                # pred + onehot - pred*onehot

    if needs_mask:
        # Padded / clamped-duplicate lanes contribute zero. Softmax is
        # per-column, so garbage in padded columns never reaches valid pixels;
        # the select below also discards any NaN/Inf produced there.
        lane = jax.lax.broadcasted_iota(jnp.int32, (1, tile), 1)
        start = (s * tiles_per_split + j) * tile
        valid = (start + lane) < hw                          # (1, T) bool
        inter_term = jnp.where(valid, inter_term, 0.0)
        union_term = jnp.where(valid, union_term, 0.0)

    inter_ref[...] += jnp.sum(inter_term, axis=1, keepdims=True)   # (C, 1)
    union_ref[...] += jnp.sum(union_term, axis=1, keepdims=True)   # (C, 1)


def soft_iou_loss(logits, target, *,
                  logits_bytes_per_step=4 * 1024 * 1024,
                  vmem_working_budget=40 * 1024 * 1024,
                  hw_tile=None,
                  num_hw_splits=None):
    """Pallas SoftIoULoss. logits: (N, C, H, W) float; target: (N, H, W) int."""
    n, c, h, w = logits.shape
    hw = h * w

    x = logits.reshape(n, c, hw)      # free view, native dtype (streamed once)
    t = target.reshape(n, 1, hw)      # native integer dtype, no wrapper cast
    x_item = x.dtype.itemsize
    t_item = t.dtype.itemsize

    # ---- HW tile: as many lanes as the bandwidth target / VMEM budget allow.
    # per-lane cost: double-buffered input blocks + ~10 f32-sized temporaries.
    per_lane_vmem = 2 * (c * x_item + t_item) + 10 * c * 4
    if hw_tile is not None:
        tile = hw_tile
    else:
        tile_vmem = max(128, (vmem_working_budget // per_lane_vmem) // 128 * 128)
        tile_bw = max(128, (logits_bytes_per_step // (c * x_item)) // 128 * 128)
        tile = min(tile_vmem, tile_bw)
    if hw <= tile:
        tile, grid_hw = hw, 1                     # single full-dim block
    else:
        tile = max(128, (tile // 128) * 128)      # multiple of 128 lanes
        grid_hw = pl.cdiv(hw, tile)

    # ---- Optional HW split so both v7x TensorCores get work when N is 1/odd.
    if num_hw_splits is None:
        num_hw_splits = 2 if (n % 2 == 1 and grid_hw >= 2) else 1
    num_hw_splits = max(1, min(num_hw_splits, grid_hw))
    tiles_per_split = pl.cdiv(grid_hw, num_hw_splits)
    needs_mask = (num_hw_splits * tiles_per_split * tile) != hw
    clamp = (num_hw_splits * tiles_per_split) != grid_hw
    last_block = grid_hw - 1

    if clamp:
        # Logical tiles past the end re-read the last valid block (clamped);
        # their contribution is masked to zero in-kernel via the logical offset.
        def hw_block(s_, j_):
            return jnp.minimum(s_ * tiles_per_split + j_, last_block)
    else:
        def hw_block(s_, j_):
            return s_ * tiles_per_split + j_

    x_spec = pl.BlockSpec((None, c, tile), lambda s_, i, j_: (i, 0, hw_block(s_, j_)))
    t_spec = pl.BlockSpec((None, 1, tile), lambda s_, i, j_: (i, 0, hw_block(s_, j_)))
    out_spec = pl.BlockSpec((None, c, 1), lambda s_, i, j_: (s_ * n + i, 0, 0))

    # ---- Explicit scoped-VMEM budget (16/32/32 MiB defaults; v7x 64 MiB phys).
    block_bytes = c * tile * x_item + tile * t_item
    est = 2 * block_bytes + 10 * c * tile * 4 + (1 << 20)
    vmem_limit = int(min(max(est, 32 << 20), 56 << 20))

    kernel = functools.partial(_soft_iou_kernel, hw=hw,
                               tiles_per_split=tiles_per_split,
                               needs_mask=needs_mask)

    inter, union = pl.pallas_call(
        kernel,
        out_shape=(
            jax.ShapeDtypeStruct((num_hw_splits * n, c, 1), jnp.float32),
            jax.ShapeDtypeStruct((num_hw_splits * n, c, 1), jnp.float32),
        ),
        grid_spec=pltpu.PrefetchScalarGridSpec(
            num_scalar_prefetch=0,
            grid=(num_hw_splits, n, tiles_per_split),
            in_specs=[x_spec, t_spec],
            out_specs=(out_spec, out_spec),
        ),
        compiler_params=pltpu.CompilerParams(
            dimension_semantics=("parallel", "parallel", "arbitrary"),
            vmem_limit_bytes=vmem_limit),
    )(x, t)

    # Tiny JAX epilogue: sum partial accumulators over HW splits, then the
    # divide / mean / negate (keeps the grid axes cleanly parallel).
    inter = inter[..., 0].reshape(num_hw_splits, n, c).sum(axis=0)   # (N, C)
    union = union[..., 0].reshape(num_hw_splits, n, c).sum(axis=0)   # (N, C)
    loss = inter / (union + jnp.float32(1e-16))
    return -jnp.mean(loss)


def soft_iou_loss_ref(logits, target, n_classes):
    n = logits.shape[0]
    pred = jax.nn.softmax(logits.astype(jnp.float32), axis=1)
    onehot = jax.nn.one_hot(target, n_classes, axis=1, dtype=jnp.float32)
    inter = (pred * onehot).reshape(n, n_classes, -1).sum(-1)
    union = (pred + onehot - pred * onehot).reshape(n, n_classes, -1).sum(-1)
    loss = inter / (union + 1e-16)
    return -jnp.mean(loss)


if __name__ == "__main__":
    root = jax.random.PRNGKey(0)

    def check(n, c, h, w, x_dtype=jnp.float32, t_dtype=jnp.int32, **kw):
        k1, k2 = jax.random.split(jax.random.fold_in(root, n * 1000 + c * 100 + h))
        logits = jax.random.normal(k1, (n, c, h, w), dtype=jnp.float32).astype(x_dtype)
        target = jax.random.randint(k2, (n, h, w), 0, c, dtype=jnp.int32).astype(t_dtype)
        out = jax.block_until_ready(soft_iou_loss(logits, target, **kw))
        ref = jax.block_until_ready(soft_iou_loss_ref(logits, target, c))
        assert jnp.allclose(out, ref, atol=1e-5, rtol=1e-5), (n, c, h, w, out, ref)

    # Basic shape from the module spec (single-block fast path).
    check(2, 4, 16, 16)
    # Multi-tile reduction + N==1 HW split (both v7x TCs) + clamped/partial
    # tiles + native int8 labels (forced small tile to exercise the pipeline).
    check(1, 3, 20, 33, t_dtype=jnp.int8, hw_tile=256)
    # Non-multiple-of-128 single block + bf16 logits streamed in native dtype.
    check(2, 5, 10, 10, x_dtype=jnp.bfloat16)

    print("KERNEL_OK")
</pallas_src>

<mosaic_0001>
module attributes {stable_mosaic.version = 11 : i64} {
  func.func @_soft_iou_kernel(%arg0: i32, %arg1: i32, %arg2: i32, %arg3: memref<1x4x256xf32, #tpu.memory_space<vmem>>, %arg4: memref<1x1x256xi32, #tpu.memory_space<vmem>>, %arg5: memref<1x4x1xf32, #tpu.memory_space<vmem>>, %arg6: memref<1x4x1xf32, #tpu.memory_space<vmem>>) attributes {dimension_semantics = [#tpu.dimension_semantics<parallel>, #tpu.dimension_semantics<parallel>, #tpu.dimension_semantics<arbitrary>], iteration_bounds = array<i64: 1, 2, 1>, scalar_prefetch = 0 : i64, scratch_operands = 0 : i64, tpu.core_type = #tpu.core_type<tc>, window_params = [{transform_indices = @transform_0, window_bounds = array<i64: 1, 4, 256>}, {transform_indices = @transform_1, window_bounds = array<i64: 1, 1, 256>}, {transform_indices = @transform_2, window_bounds = array<i64: 1, 4, 1>}, {transform_indices = @transform_3, window_bounds = array<i64: 1, 4, 1>}]} {
    %c0_i32 = arith.constant 0 : i32
    %0 = arith.cmpi eq, %arg2, %c0_i32 : i32
    %1 = arith.extui %0 : i1 to i32
    %c0_i32_0 = arith.constant 0 : i32
    %2 = arith.cmpi ne, %1, %c0_i32_0 : i32
    scf.if %2 {
      %cst_23 = arith.constant 0.000000e+00 : f32
      %40 = vector.broadcast %cst_23 : f32 to vector<4x1xf32>
      %c0_24 = arith.constant 0 : index
      %c0_25 = arith.constant 0 : index
      %c0_26 = arith.constant 0 : index
      %41 = vector.load %arg5[%c0_24, %c0_25, %c0_26] : memref<1x4x1xf32, #tpu.memory_space<vmem>>, vector<1x4x1xf32>
      %42 = vector.shape_cast %41 : vector<1x4x1xf32> to vector<4x1xf32>
      %43 = vector.shape_cast %40 : vector<4x1xf32> to vector<1x4x1xf32>
      tpu.vector_store %arg5[%c0_24, %c0_25, %c0_26], %43 {strides = array<i32>} : memref<1x4x1xf32, #tpu.memory_space<vmem>>, vector<1x4x1xf32>,
      %cst_27 = arith.constant 0.000000e+00 : f32
      %44 = vector.broadcast %cst_27 : f32 to vector<4x1xf32>
      %c0_28 = arith.constant 0 : index
      %c0_29 = arith.constant 0 : index
      %c0_30 = arith.constant 0 : index
      %45 = vector.load %arg6[%c0_28, %c0_29, %c0_30] : memref<1x4x1xf32, #tpu.memory_space<vmem>>, vector<1x4x1xf32>
      %46 = vector.shape_cast %45 : vector<1x4x1xf32> to vector<4x1xf32>
      %47 = vector.shape_cast %44 : vector<4x1xf32> to vector<1x4x1xf32>
      tpu.vector_store %arg6[%c0_28, %c0_29, %c0_30], %47 {strides = array<i32>} : memref<1x4x1xf32, #tpu.memory_space<vmem>>, vector<1x4x1xf32>,
    } else {
    }
    %c0 = arith.constant 0 : index
    %c0_1 = arith.constant 0 : index
    %c0_2 = arith.constant 0 : index
    %3 = vector.load %arg3[%c0, %c0_1, %c0_2] : memref<1x4x256xf32, #tpu.memory_space<vmem>>, vector<1x4x256xf32>
    %4 = vector.shape_cast %3 : vector<1x4x256xf32> to vector<4x256xf32>
    %c0_3 = arith.constant 0 : index
    %c0_4 = arith.constant 0 : index
    %c0_5 = arith.constant 0 : index
    %5 = vector.load %arg4[%c0_3, %c0_4, %c0_5] : memref<1x1x256xi32, #tpu.memory_space<vmem>>, vector<1x1x256xi32>
    %6 = vector.shape_cast %5 : vector<1x1x256xi32> to vector<1x256xi32>
    %cst = arith.constant dense<0xFF800000> : vector<256xf32>
    %7 = vector.multi_reduction <maximumf>, %4, %cst [0] : vector<4x256xf32> to vector<256xf32>
    %8 = vector.shape_cast %7 : vector<256xf32> to vector<1x256xf32>
    %9 = vector.broadcast %8 : vector<1x256xf32> to vector<4x256xf32>
    %10 = arith.subf %4, %9 : vector<4x256xf32>
    %11 = math.exp %10 : vector<4x256xf32>
    %cst_6 = arith.constant dense<0.000000e+00> : vector<256xf32>
    %12 = vector.multi_reduction <add>, %11, %cst_6 [0] : vector<4x256xf32> to vector<256xf32>
    %13 = vector.shape_cast %12 : vector<256xf32> to vector<1x256xf32>
    %14 = tpu.reciprocal %13 : vector<1x256xf32> -> vector<1x256xf32>
    %15 = vector.broadcast %14 : vector<1x256xf32> to vector<4x256xf32>
    %16 = arith.mulf %11, %15 : vector<4x256xf32>
    %17 = tpu.iota {dimensions = array<i32: 0>} : vector<4x256xi32>
    %18 = vector.broadcast %6 : vector<1x256xi32> to vector<4x256xi32>
    %19 = arith.cmpi eq, %18, %17 : vector<4x256xi32>
    %cst_7 = arith.constant 0.000000e+00 : f32
    %20 = vector.broadcast %cst_7 : f32 to vector<4x256xf32>
    %21 = arith.select %19, %16, %20 : vector<4x256xi1>, vector<4x256xf32>
    %cst_8 = arith.constant 1.000000e+00 : f32
    %22 = vector.broadcast %cst_8 : f32 to vector<4x256xf32>
    %23 = arith.select %19, %22, %16 : vector<4x256xi1>, vector<4x256xf32>
    %c0_9 = arith.constant 0 : index
    %c0_10 = arith.constant 0 : index
    %c0_11 = arith.constant 0 : index
    %24 = vector.load %arg5[%c0_9, %c0_10, %c0_11] : memref<1x4x1xf32, #tpu.memory_space<vmem>>, vector<1x4x1xf32>
    %25 = vector.shape_cast %24 : vector<1x4x1xf32> to vector<4x1xf32>
    %cst_12 = arith.constant dense<0.000000e+00> : vector<4xf32>
    %26 = vector.multi_reduction <add>, %21, %cst_12 [1] : vector<4x256xf32> to vector<4xf32>
    %27 = vector.shape_cast %26 : vector<4xf32> to vector<4x1xf32>
    %28 = arith.addf %25, %27 : vector<4x1xf32>
    %c0_13 = arith.constant 0 : index
    %c0_14 = arith.constant 0 : index
    %c0_15 = arith.constant 0 : index
    %29 = vector.load %arg5[%c0_13, %c0_14, %c0_15] : memref<1x4x1xf32, #tpu.memory_space<vmem>>, vector<1x4x1xf32>
    %30 = vector.shape_cast %29 : vector<1x4x1xf32> to vector<4x1xf32>
    %31 = vector.shape_cast %28 : vector<4x1xf32> to vector<1x4x1xf32>
    tpu.vector_store %arg5[%c0_13, %c0_14, %c0_15], %31 {strides = array<i32>} : memref<1x4x1xf32, #tpu.memory_space<vmem>>, vector<1x4x1xf32>,
    %c0_16 = arith.constant 0 : index
    %c0_17 = arith.constant 0 : index
    %c0_18 = arith.constant 0 : index
    %32 = vector.load %arg6[%c0_16, %c0_17, %c0_18] : memref<1x4x1xf32, #tpu.memory_space<vmem>>, vector<1x4x1xf32>
    %33 = vector.shape_cast %32 : vector<1x4x1xf32> to vector<4x1xf32>
    %cst_19 = arith.constant dense<0.000000e+00> : vector<4xf32>
    %34 = vector.multi_reduction <add>, %23, %cst_19 [1] : vector<4x256xf32> to vector<4xf32>
    %35 = vector.shape_cast %34 : vector<4xf32> to vector<4x1xf32>
    %36 = arith.addf %33, %35 : vector<4x1xf32>
    %c0_20 = arith.constant 0 : index
    %c0_21 = arith.constant 0 : index
    %c0_22 = arith.constant 0 : index
    %37 = vector.load %arg6[%c0_20, %c0_21, %c0_22] : memref<1x4x1xf32, #tpu.memory_space<vmem>>, vector<1x4x1xf32>
    %38 = vector.shape_cast %37 : vector<1x4x1xf32> to vector<4x1xf32>
    %39 = vector.shape_cast %36 : vector<4x1xf32> to vector<1x4x1xf32>
    tpu.vector_store %arg6[%c0_20, %c0_21, %c0_22], %39 {strides = array<i32>} : memref<1x4x1xf32, #tpu.memory_space<vmem>>, vector<1x4x1xf32>,
    return
  }
  func.func @transform_0(%arg0: i32, %arg1: i32, %arg2: i32) -> (i32, i32, i32) {
    %c1_i32 = arith.constant 1 : i32
    %0 = arith.muli %arg0, %c1_i32 : i32
    %1 = arith.addi %0, %arg2 : i32
    %c0_i32 = arith.constant 0 : i32
    %c0_i32_0 = arith.constant 0 : i32
    return %arg1, %c0_i32, %1 : i32, i32, i32
  }
  func.func @transform_1(%arg0: i32, %arg1: i32, %arg2: i32) -> (i32, i32, i32) {
    %c1_i32 = arith.constant 1 : i32
    %0 = arith.muli %arg0, %c1_i32 : i32
    %1 = arith.addi %0, %arg2 : i32
    %c0_i32 = arith.constant 0 : i32
    %c0_i32_0 = arith.constant 0 : i32
    return %arg1, %c0_i32, %1 : i32, i32, i32
  }
  func.func @transform_2(%arg0: i32, %arg1: i32, %arg2: i32) -> (i32, i32, i32) {
    %c2_i32 = arith.constant 2 : i32
    %0 = arith.muli %arg0, %c2_i32 : i32
    %1 = arith.addi %0, %arg1 : i32
    %c0_i32 = arith.constant 0 : i32
    %c0_i32_0 = arith.constant 0 : i32
    %c0_i32_1 = arith.constant 0 : i32
    return %1, %c0_i32, %c0_i32_0 : i32, i32, i32
  }
  func.func @transform_3(%arg0: i32, %arg1: i32, %arg2: i32) -> (i32, i32, i32) {
    %c2_i32 = arith.constant 2 : i32
    %0 = arith.muli %arg0, %c2_i32 : i32
    %1 = arith.addi %0, %arg1 : i32
    %c0_i32 = arith.constant 0 : i32
    %c0_i32_0 = arith.constant 0 : i32
    %c0_i32_1 = arith.constant 0 : i32
    return %1, %c0_i32, %c0_i32_0 : i32, i32, i32
  }
}

</mosaic_0001>

<bundles_post_ra>
// kernel: tpu_custom_call.1
= control target key start
LH: loop header
LB: loop body
LE: loop exit
PB: predicated region body
PF: predicated region fallthrough
CT: control target
= control target key end

     0   :  { %9 = vsyncpa [#allocation3], 0  ;;  %s961_s0 = inlined_call_operand.hbm [shape: f32[2,4,256], index: 0, kind: input, shape index: {}]   ;;  %s962_s1 = inlined_call_operand.hbm [shape: s32[2,1,256], index: 1, kind: input, shape index: {}]   ;;  %s963_s2 = inlined_call_operand.vmem [shape: f32[2,4,1], index: 2, kind: output, shape index: {0}]   ;;  %s964_s3 = inlined_call_operand.vmem [shape: f32[2,4,1], index: 3, kind: output, shape index: {1}]  }
   0x1   :  { %11 = vsyncpa [#allocation3 + $0x1], 0 }
   0x2   :  { %12 = vsyncpa [#allocation5], 0 }
   0x3   :  { %14 = vsyncpa [#allocation5 + $0x1], 0  ;;  %s763_s12 = smov 0   ;;  %s765_s13 = smov 0  }
   0x4   :  { %s767_s14 = smov 0   ;;  %s769_s15 = smov 0  }
   0x5   :  { %s771_s16 = smov 0   ;;  %s773_s17 = smov 0  }
   0x6 LB: > { %s537_s18 = sadd.s32 4294967295, %s738_s17   ;;  %s35_s19 = sadd.s32 1, %s734_s16  ;;  %s738_s17 = sphi %s773_s17, %s20_s17   ;;  %s734_s16 = sphi %s771_s16, %s978_s16   ;;  %s730_s15 = sphi %s769_s15, %s977_s15   ;;  %s726_s14 = sphi %s767_s14, %s976_s14   ;;  %s722_s13 = sphi %s765_s13, %s975_s13   ;;  %s718_s12 = sphi %s763_s12, %s974_s12  }
   0x7   : > { %p37_p0 = scmp.ge.s32.totalorder %s35_s19, 2  ;;  %s50_s20 = sadd.s32 1, %s726_s14 }
   0x8   : > { %p57_p1 = scmp.ne.s32.totalorder %s726_s14, %s722_s13  ;;  %p58_p2 = scmp.eq.s32.totalorder %s738_s17, 0 }
   0x9   : > { %s980_s19 = smov (%p37_p0, %s35_s19), 0  ;;  %p63_p4 = scmp.ne.s32.totalorder %s722_s13, %s718_s12 }
   0xa   : > { %p799_p3 = por %p58_p2, %p57_p1  ;;  %s45_s22 = ssub.s32 %s734_s16, %s980_s19 }
   0xb   : > { %p64_p5 = scmp.eq.s32.totalorder %s537_s18, 0  ;;  %p48_p6 = scmp.eq.s32.totalorder %s45_s22, 0 }
   0xc   : > { %p567_p8 = scmp.lt.s32.totalorder %s738_s17, 2  ;;  %s815_s25 = sand.u32 1, %s726_s14  }
   0xd   : > { %p806_p7 = por %p64_p5, %p63_p4  ;;  %s554_s26 = sshll.u32 %s734_s16, 7 }
   0xe   : > { %s812_s24 = scalar_select %p48_p6, %s726_s14, %s50_s20  }
   0xf   : > { %s967_s23 = scalar_select %p806_p7, 1, 0 }
  0x10   : > { %s541_s27 = sshll.u32 %s815_s25, 3  ;;  %s822_s30 = scalar_lea.hbm %s961_s0, %s554_s26 }
  0x11   : > { %s181_s4 = scalar_lea.vmem [#allocation2], %s541_s27  ;;  %p826_p9 = pnand %p567_p8, %p799_p3 }
  0x12   : > { %s192_s5 = sshll.u32 %s181_s4, 4  ;;  %s178_s7 = scalar_lea.sflag [#allocation3], %s815_s25  ;;  %s830_s5 = int_to_ptr.vmem [resolvable:$true] %s192_s5 }
  0x13   : > { %s624_s8 = scalar_lea.hbm %s822_s30, 128  ;;  %p626_p13 = pneg %p826_p9 }
  0x14   : > { %p625_p12 = scmp.ne.s32.totalorder %s822_s30, %s624_s8  ;;  %s629_s11 = scalar_lea.hbm %s961_s0, 256 }
  0x15   : > { %p630_p2 = scmp.lt.u32.totalorder %s822_s30, %s961_s0  ;;  %p631_p3 = scmp.lt.u32.totalorder %s629_s11, %s624_s8 }
  0x16   : > { %p627_p0 = pnand %p626_p13, %p625_p12  ;;  %p633_p5 = scmp.lt.u32.totalorder %s624_s8, %s822_s30 }
  0x17   : > { %p632_p4 = por %p631_p3, %p630_p2 }
  0x18   : > { %p628_p1 = pneg %p627_p0 }
  0x19   : > { %p634_p6 = por %p633_p5, %p632_p4 }
  0x1b   : > { %p635_p8 = pnand %p634_p6, %p628_p1 }
  0x1d   : > { %638 = shalt.err (!%p635_p8)
}
  0x1e   : > { %s639_s20 = scalar_lea.vmem %s830_s5, 128  ;;  %s740_s21 = smov [#allocation2]  }
  0x1f   : > { %p640_p12 = scmp.ne.s32.totalorder %s830_s5, %s639_s20  ;;  %s644_s22 = sshll.u32 %s740_s21, 4  ;;  %s645_s22 = int_to_ptr.vmem [resolvable:$false] %s644_s22 }
  0x20   : > { %s646_s26 = scalar_lea.vmem %s645_s22, 256  ;;  %p647_p11 = scmp.lt.s32.totalorder %s830_s5, %s645_s22 }
  0x21   : > { %p642_p0 = pnand %p640_p12, %p626_p13  ;;  %p648_p2 = scmp.lt.s32.totalorder %s646_s26, %s639_s20 }
  0x23   : > { %p643_p10 = pneg %p642_p0  ;;  %p649_p3 = por %p648_p2, %p647_p11 }
  0x25   : > { %p650_p4 = pnand %p649_p3, %p643_p10 }
  0x27   : > { %653 = shalt.err (!%p650_p4)
}
  0x28   : > { %563 = dma.hbm_to_vmem [thread:$0]  (!%p826_p9), %s822_s30, 128, %s830_s5, %s178_s7  }
  0x29   : > { %p969_p1 = scmp.lt.s32.totalorder %s738_s17, 3  ;;  %p970_p5 = scmp.ge.s32.totalorder %s738_s17, 1 }
  0x2a   : > { %s544_s28 = sshll.u32 %s815_s25, 1  ;;  %s555_s29 = sshll.u32 %s734_s16, 5 }
  0x2b   : > { %p864_p6 = pnand %p970_p5, %p969_p1  ;;  %s873_s9 = scalar_lea.hbm %s962_s1, %s555_s29 }
  0x2c   : > { %s203_s10 = scalar_lea.vmem [#allocation4], %s544_s28  ;;  %s200_s30 = scalar_lea.sflag [#allocation5], %s815_s25 }
  0x2d   : > { %s971_s27 = scalar_select %p864_p6, 1, 0 }
  0x2e   : > { %s214_s11 = sshll.u32 %s203_s10, 4  ;;  %s654_s5 = scalar_lea.hbm %s873_s9, 32  ;;  %s215_s11 = int_to_ptr.vmem [resolvable:$true] %s214_s11 }
  0x2f   : > { %p655_p10 = scmp.ne.s32.totalorder %s873_s9, %s654_s5  ;;  %s659_s18 = scalar_lea.hbm %s962_s1, 64 }
  0x30   : > { %p660_p12 = scmp.lt.u32.totalorder %s873_s9, %s962_s1  ;;  %p661_p0 = scmp.lt.u32.totalorder %s659_s18, %s654_s5 }
  0x31   : > { %p657_p11 = pnand %p655_p10, %p626_p13  ;;  %p663_p3 = scmp.lt.u32.totalorder %s654_s5, %s873_s9 }
  0x32   : > { %p662_p2 = por %p661_p0, %p660_p12 }
  0x33   : > { %p658_p8 = pneg %p657_p11 }
  0x34   : > { %p664_p4 = por %p663_p3, %p662_p2 }
  0x36   : > { %p665_p1 = pnand %p664_p4, %p658_p8 }
  0x38   : > { %668 = shalt.err (!%p665_p1)
}
  0x39   : > { %s669_s25 = scalar_lea.vmem %s215_s11, 32  ;;  %s741_s22 = smov [#allocation4]  }
  0x3a   : > { %p670_p5 = scmp.ne.s32.totalorder %s215_s11, %s669_s25  ;;  %s674_s26 = sshll.u32 %s741_s22, 4  ;;  %s675_s26 = int_to_ptr.vmem [resolvable:$false] %s674_s26 }
  0x3b   : > { %s676_s28 = scalar_lea.vmem %s675_s26, 64  ;;  %p677_p7 = scmp.lt.s32.totalorder %s215_s11, %s675_s26 }
  0x3c   : > { %p672_p10 = pnand %p670_p5, %p626_p13  ;;  %p678_p6 = scmp.lt.s32.totalorder %s676_s28, %s669_s25 }
  0x3e   : > { %p673_p11 = pneg %p672_p10  ;;  %p679_p0 = por %p678_p6, %p677_p7 }
  0x40   : > { %p680_p12 = pnand %p679_p0, %p673_p11 }
  0x42   : > { %683 = shalt.err (!%p680_p12)
}
  0x43   : > { %566 = dma.hbm_to_vmem [thread:$0]  (!%p826_p9), %s873_s9, 32, %s215_s11, %s200_s30  }
  0x44   : > { %p972_p8 = scmp.ne.s32.totalorder %s971_s27, 0 }
  0x45   : > { %s225_s29 = sand.u32 (!%p972_p8), 1, %s722_s13   ;;  %p973_p13 = scmp.ne.s32.totalorder (!%p972_p8), %s967_s23, 0 }
  0x46   : > { %223 = sbr.rel (%p972_p8) target bundleno = 299 (0x12b), region = 28  ;;  %s548_s4 = sshll.u32 (!%p972_p8), %s225_s29, 3 }
  0x47   : > { %s226_s8 = scalar_lea.sflag (!%p972_p8), [#allocation3], %s225_s29  ;;  %s229_s10 = scalar_lea.vmem (!%p972_p8), [#allocation2], %s548_s4 }
  0x4d   : > { %709 = dma.done.wait (%p973_p13), %s226_s8, 128  }
  0x4e   : > { %711 = vsyncadd (%p973_p13), %s226_s8, 4294967168  ;;  %s549_s5 = sshll.u32 %s225_s29, 1  ;;  %s235_s7 = scalar_lea.sflag [#allocation5], %s225_s29 }
  0x4f   : > { %s902_s6 = scalar_lea.vmem [#allocation4], %s549_s5 }
  0x50   : > { %713 = dma.done.wait (%p973_p13), %s235_s7, 32  }
  0x51   : > { %715 = vsyncadd (%p973_p13), %s235_s7, 4294967264  ;;  %p279_p7 = scmp.lt.s32.totalorder %s730_s15, 1  ;;  %vm297_vm0 = vcmask 3072   ;;  %vm305_vm1 = vcmask 1043456   ;;  %v742_v0 = vmov 0.0   ;;  %v300_v1 = vld [vmem:[%s229_s10] sm:$0xff]  ;;  %v351_v35 = vlaneseq }
  0x52   : > { %v303_v2 = vcombine.high %v300_v1, %v300_v1  ;;  %v306_v3 = vsel %vm305_vm1, %v300_v1, -inf  ;;  %v301_v39 = vld [vmem:[%s902_s6] sm:$0x3] }
  0x53   : > { %s982_s15 = smov (!%p279_p7, %s730_s15), 1  ;;  %v307_v4 = vrot.slane %v306_v3, 4  ;;  %v352_v37 = vshrl.u32 %v351_v35, 7 }
  0x54   : > { %s550_s27 = sshll.u32 %s982_s15, 2  ;;  %v313_v5 = vsel %vm305_vm1, %v303_v2, -inf }
  0x55   : > { %s918_s30 = scalar_lea.vmem %s963_s2, %s550_s27  ;;  %v308_v6 = vmax.f32 %v306_v3, %v307_v4  ;;  %v314_v7 = vrot.slane %v313_v5, 4  ;;  %v355_v38 = vsub.s32 0, %v352_v37  ;;  %v359_v40 = vsub.s32 1, %v352_v37  ;;  %s290_s18 = scalar_lea.vmem %s964_s3, %s550_s27 }
  0x56   : > { %298 = vst.msk [vmem:[%s918_s30] sm:$0xf] %vm297_vm0, %v742_v0  ;;  %299 = vst.msk [vmem:[%s290_s18] sm:$0xf] %vm297_vm0, %v742_v0 }
  0x57   : > { %v309_v8 = vrot.slane %v308_v6, 2  ;;  %v315_v9 = vmax.f32 %v313_v5, %v314_v7  ;;  %v356_v42 = vrot.slane %v301_v39, %v355_v38  ;;  %v360_v44 = vrot.slane %v301_v39, %v359_v40 }
  0x59   : > { %v310_v10 = vmax.f32 %v308_v6, %v309_v8  ;;  %v316_v11 = vrot.slane %v315_v9, 2  ;;  %vm361_vm2 = vcmp.eq.s32.totalorder %v356_v42, %v352_v37  ;;  %vm362_vm3 = vcmp.eq.s32.totalorder %v360_v44, %v352_v37 }
  0x5b   : > { %v311_v12 = vrot.slane %v310_v10, 1  ;;  %v317_v13 = vmax.f32 %v315_v9, %v316_v11 }
  0x5d   : > { %v312_v14 = vmax.f32 %v310_v10, %v311_v12  ;;  %v318_v15 = vrot.slane %v317_v13, 1  ;;  %v370_v58 = vld [vmem:[%s918_s30] sm:$0xf] }
  0x5e   : > { %v379_v61 = vld [vmem:[%s290_s18] sm:$0xf] }
  0x5f   : > { %v319_v16 = vmax.f32 %v317_v13, %v318_v15 }
  0x61   : > { %v322_v17 = vcombine.low %v312_v14, %v319_v16 }
  0x63   : > { %v324_v18 = vsub.f32 %v300_v1, %v322_v17 }
  0x65   : > { %v325_v19 = vmul.f32 1.442695, %v324_v18 }
  0x67   : > { %618 = vpow2.f32 %v325_v19 }
  0x71   : > { %v619_v20 = vpop.eup %618 }
  0x72   : > { %v328_v21 = vcombine.high %v619_v20, %v619_v20  ;;  %v330_v22 = vsel %vm305_vm1, %v619_v20, 0.0 }
  0x73   : > { %v331_v23 = vrot.slane %v330_v22, 4 }
  0x74   : > { %v337_v24 = vsel %vm305_vm1, %v328_v21, 0.0 }
  0x75   : > { %v332_v25 = vadd.f32 %v331_v23, %v330_v22  ;;  %v338_v26 = vrot.slane %v337_v24, 4 }
  0x77   : > { %v333_v27 = vrot.slane %v332_v25, 2  ;;  %v339_v28 = vadd.f32 %v338_v26, %v337_v24 }
  0x79   : > { %v334_v29 = vadd.f32 %v333_v27, %v332_v25  ;;  %v340_v30 = vrot.slane %v339_v28, 2 }
  0x7b   : > { %v335_v31 = vrot.slane %v334_v29, 1  ;;  %v341_v32 = vadd.f32 %v340_v30, %v339_v28 }
  0x7d   : > { %v336_v33 = vadd.f32 %v335_v31, %v334_v29  ;;  %v342_v34 = vrot.slane %v341_v32, 1 }
  0x7f   : > { %v343_v36 = vadd.f32 %v342_v34, %v341_v32  ;;  %620 = vrcp.f32 %v336_v33 }
  0x81   : > { %622 = vrcp.f32 %v343_v36 }
  0x89   : > { %v621_v41 = vpop.eup %620 }
  0x8b   : > { %v623_v43 = vpop.eup %622 }
  0x8c   : > { %v348_v45 = vcombine.low %v621_v41, %v623_v43 }
  0x8e   : > { %v350_v46 = vmul.f32 %v619_v20, %v348_v45 }
  0x90   : > { %v364_v47 = vcombine.high %v350_v46, %v350_v46  ;;  %v366_v48 = vsel %vm361_vm2, %v350_v46, 0.0  ;;  %v368_v49 = vsel %vm361_vm2, 1.0, %v350_v46 }
  0x91   : > { %v371_v50 = vsel %vm305_vm1, %v366_v48, 0.0  ;;  %v380_v54 = vsel %vm305_vm1, %v368_v49, 0.0 }
  0x92   : > { %v367_v51 = vsel %vm362_vm3, %v364_v47, 0.0  ;;  %v369_v52 = vsel %vm362_vm3, 1.0, %v364_v47 }
  0x93   : > { %v372_v53 = vsel %vm305_vm1, %v367_v51, 0.0  ;;  %v381_v55 = vsel %vm305_vm1, %v369_v52, 0.0 }
  0x94   : > { %v373_v56 = vadd.f32 %v372_v53, %v371_v50  ;;  %v382_v57 = vadd.f32 %v381_v55, %v380_v54 }
  0x96   : > { %374 = vadd.xlane.f32.xlu0 %v373_v56 }
  0x9a   : > { %383 = vadd.xlane.f32.xlu0 %v382_v57 }
 0x123   : > { %v375_v59 = vpop.xlane.xlu0 %374 }
 0x124   : > { %v376_v60 = vadd.f32 %v375_v59, %v370_v58 }
 0x126   : > { %378 = vst.msk [vmem:[%s918_s30] sm:$0xf] %vm297_vm0, %v376_v60 }
 0x127   : > { %v384_v62 = vpop.xlane.xlu0 %383 }
 0x128   : > { %v385_v63 = vadd.f32 %v384_v62, %v379_v61 }
 0x12a   : > { %386 = vst.msk [vmem:[%s290_s18] sm:$0xf] %vm297_vm0, %v385_v63 }
 0x12b PF: > { %s20_s17 = sadd.s32 1, %s738_s17   ;;  %s974_s12 = smov %s722_s13 }
 0x12c   : > { %p17_p9 = scmp.ge.s32.totalorder %s20_s17, 4   ;;  %s975_s13 = smov %s726_s14 }
 0x12d   : > { %s976_s14 = smov %s812_s24  ;;  %s977_s15 = smov %s734_s16 }
 0x12e   : > { %s978_s16 = smov %s980_s19  ;;  %19 = sbr.rel (!%p17_p9) target bundleno = 6 (0x6), region = 97 }
 0x135   :  { %432 = vsyncpa [#allocation3], 1 }
 0x136   :  { %434 = vsyncpa [#allocation3 + $0x1], 1 }
 0x137   :  { %435 = vsyncpa [#allocation5], 1 }
 0x138   :  { %437 = vsyncpa [#allocation5 + $0x1], 1 }

</bundles_post_ra>
